<compile_context>
chip_gen: v5e
topology: v5e:2x2
jax: 0.10.0
libtpu: 0.0.40
codegen_flags: <defaults>
</compile_context>

<pallas_src>
import functools

import jax
import jax.numpy as jnp
from jax.experimental import pallas as pl
from jax.experimental.pallas import tpu as pltpu


def _round_up(x, m):
    return ((x + m - 1) // m) * m


def _cdiv(a, b):
    return (a + b - 1) // b


def _tpu_device_kind():
    try:
        dev = jax.devices()[0]
        if dev.platform == "tpu":
            return dev.device_kind.lower()
    except Exception:
        pass
    return ""


def _mxu_align():
    """K/N padding granularity for the dominant matmul: 256 for the 256-wide
    MXUs on v6e/v7x, 128 otherwise (128 is always correct, just narrower)."""
    kind = _tpu_device_kind()
    for tok in ("v6", "v7", "7x"):
        if tok in kind:
            return 256
    return 128


def _vmem_cap_bytes():
    """Physical VMEM minus headroom; conservative fallback fits every
    generation (v7x has only 64 MiB physical per TensorCore)."""
    try:
        cap = getattr(pltpu.get_tpu_info(), "vmem_capacity_bytes", None)
        if cap:
            return max(int(cap) - (16 << 20), 32 << 20)
    except Exception:
        pass
    return 48 << 20


def bert_classifier_kernel(x_ref, w1_ref, b1_ref, w2_ref, b2_ref, o_ref):
    # x:  [TB, Hp]   f32/bf16      w1: [Hp, C1p]  bf16    b1: [1, C1p] f32
    # w2: [C1p, C2p] bf16 (BN folded)   b2: [1, C2p] f32 (BN folded, -1e30 pad)
    # o:  [TB, C2p]
    x = x_ref[...].astype(jnp.bfloat16)          # no-op if already bf16
    # dropout(p=0.1) is identity in eval mode.
    # dense layer 1 (MXU, bf16 operands, f32 accumulation) + bias, relu (VPU)
    h = jnp.dot(x, w1_ref[...], preferred_element_type=jnp.float32) + b1_ref[...]
    h = jnp.maximum(h, 0.0)
    # classifier head; eval-mode BatchNorm1d already folded into w2/b2
    logits = jnp.dot(h.astype(jnp.bfloat16), w2_ref[...],
                     preferred_element_type=jnp.float32) + b2_ref[...]
    # numerically stable softmax over the lane-dense, -1e30-padded last dim;
    # exact f32 reciprocal so every row sums to 1 to f32 rounding.
    m = jnp.max(logits, axis=-1, keepdims=True)
    e = jnp.exp(logits - m)
    denom = jnp.sum(e, axis=-1, keepdims=True)
    o_ref[...] = (e / denom).astype(o_ref.dtype)


def prepare_params(params, *, eps=1e-5, mxu_align=None):
    """One-time host-side preprocessing. Folds eval-mode BatchNorm1d into the
    classifier head, pads to lane-/MXU-aligned shapes and casts MXU operands to
    bf16. Call once and reuse; the per-call forward never touches the weights."""
    if mxu_align is None:
        mxu_align = _mxu_align()

    w1 = params["w1"].astype(jnp.float32)                  # [H, C1]
    b1 = params["b1"].astype(jnp.float32).reshape(1, -1)   # [1, C1]
    w2 = params["w2"].astype(jnp.float32)                  # [C1, C2]
    b2 = params["b2"].astype(jnp.float32).reshape(1, -1)   # [1, C2]
    gamma = params["bn_gamma"].astype(jnp.float32)
    beta = params["bn_beta"].astype(jnp.float32)
    r_mean = params["bn_running_mean"].astype(jnp.float32)
    r_var = params["bn_running_var"].astype(jnp.float32)

    H, C1 = w1.shape
    C2 = w2.shape[1]

    # Fold eval-mode BN into the classifier head:
    #   (relu(xW1+b1)*scale + shift) W2 + b2
    #     = relu(xW1+b1) (scale[:,None]*W2) + (shift@W2 + b2)
    scale = gamma / jnp.sqrt(r_var + eps)                  # [C1]
    shift = beta - r_mean * scale                          # [C1]
    w2_f = scale[:, None] * w2                             # [C1, C2]
    b2_f = shift[None, :] @ w2 + b2                        # [1, C2]

    Hp = _round_up(H, mxu_align)
    C1p = _round_up(C1, mxu_align)
    C2p = _round_up(C2, 128)   # keep 128: classifier matmul / softmax are tiny

    w1_p = jnp.pad(w1, ((0, Hp - H), (0, C1p - C1))).astype(jnp.bfloat16)
    b1_p = jnp.pad(b1, ((0, 0), (0, C1p - C1)))                      # f32
    w2_p = jnp.pad(w2_f, ((0, C1p - C1), (0, C2p - C2))).astype(jnp.bfloat16)
    # padded logit columns get a huge negative bias so softmax assigns them 0
    b2_p = jnp.full((1, C2p), -1e30, jnp.float32).at[:, :C2].set(b2_f)

    return {"w1": w1_p, "b1": b1_p, "w2": w2_p, "b2": b2_p}


def bert_classifier_forward(features, prepared, *, categories, batch_tile=512,
                            out_dtype=jnp.float32):
    """features: [B, hidden_size] float. Returns softmax probs [B, categories]."""
    w1_p, b1_p = prepared["w1"], prepared["b1"]
    w2_p, b2_p = prepared["w2"], prepared["b2"]
    B, H = features.shape
    Hp, C1p = w1_p.shape
    C2p = w2_p.shape[1]

    # --- batch tiling: near-equal tiles (pad waste < 16 rows/tile), multiples
    # of 16 (bf16 packs 2 rows/sublane), and >=2 grid steps when B allows so
    # ("parallel",) keeps both v7x TensorCores busy.
    num_tiles = max(1, _cdiv(B, batch_tile))
    if num_tiles == 1 and B > 16:
        num_tiles = 2
    TB = _round_up(_cdiv(B, num_tiles), 16)
    Bp = TB * num_tiles

    # --- features: never materialize a padded f32 copy. If already aligned,
    # pass straight through (bf16 cast happens in-kernel, hidden under MXU);
    # otherwise cast to bf16 first, then pad.
    if B == Bp and H == Hp:
        x_p = features
    else:
        x_p = jnp.pad(features.astype(jnp.bfloat16), ((0, Bp - B), (0, Hp - H)))
    x_bytes = jnp.dtype(x_p.dtype).itemsize
    out_bytes = jnp.dtype(out_dtype).itemsize

    # --- VMEM budget: double-buffered x/out tiles, double-buffered weight
    # blocks (constant-index inputs still get two buffers by default), plus the
    # in-kernel f32 h / logits / exp temporaries and bf16 casts.
    weight_bytes = Hp * C1p * 2 + C1p * 4 + C1p * C2p * 2 + C2p * 4
    vmem_bytes = (2 * TB * Hp * x_bytes            # x tiles
                  + TB * Hp * 2                    # in-kernel bf16 x
                  + 2 * TB * C2p * out_bytes       # output tiles
                  + 2 * weight_bytes               # w1/b1/w2/b2 (double-buffered)
                  + TB * C1p * (4 + 2)             # f32 h + bf16 h
                  + 2 * TB * C2p * 4)              # logits + exp
    vmem_limit = max(16 << 20,
                     min(_vmem_cap_bytes(), int(1.5 * vmem_bytes) + (2 << 20)))

    cost = pl.CostEstimate(
        flops=2 * Bp * (Hp * C1p + C1p * C2p),
        transcendentals=Bp * C2p,
        bytes_accessed=(Bp * Hp * x_bytes + weight_bytes + Bp * C2p * out_bytes),
    )

    # TODO(synk): when this head runs back-to-back with other layers at tiny B,
    # prefetch w1/w2 via a cross-call semaphore future instead of paying their
    # DMA serially at grid step 0.
    out_p = pl.pallas_call(
        bert_classifier_kernel,
        out_shape=jax.ShapeDtypeStruct((Bp, C2p), out_dtype),
        grid=(num_tiles,),
        in_specs=[
            pl.BlockSpec((TB, Hp), lambda i: (i, 0)),     # features tile
            pl.BlockSpec((Hp, C1p), lambda i: (0, 0)),    # w1 (VMEM-resident)
            pl.BlockSpec((1, C1p), lambda i: (0, 0)),     # b1 (resident)
            pl.BlockSpec((C1p, C2p), lambda i: (0, 0)),   # w2 (resident, BN folded)
            pl.BlockSpec((1, C2p), lambda i: (0, 0)),     # b2 (resident, BN folded)
        ],
        out_specs=pl.BlockSpec((TB, C2p), lambda i: (i, 0)),
        compiler_params=pltpu.CompilerParams(
            dimension_semantics=("parallel",),
            vmem_limit_bytes=vmem_limit,
        ),
        cost_estimate=cost,
    )(x_p, w1_p, b1_p, w2_p, b2_p)

    return out_p[:B, :categories]


def init_params(key, hidden_size, classifier_hsz, categories):
    k1, k2 = jax.random.split(key)

    def xavier_normal(k, fan_in, fan_out):
        std = (2.0 / (fan_in + fan_out)) ** 0.5
        # PyTorch weight shape is [out, in]; store transposed [in, out].
        return jax.random.normal(k, (fan_in, fan_out), dtype=jnp.float32) * std

    return {
        "w1": xavier_normal(k1, hidden_size, classifier_hsz),
        "b1": jnp.zeros((1, classifier_hsz), jnp.float32),
        "w2": xavier_normal(k2, classifier_hsz, categories),
        "b2": jnp.zeros((1, categories), jnp.float32),
        # BatchNorm1d PyTorch defaults
        "bn_gamma": jnp.ones((classifier_hsz,), jnp.float32),
        "bn_beta": jnp.zeros((classifier_hsz,), jnp.float32),
        "bn_running_mean": jnp.zeros((classifier_hsz,), jnp.float32),
        "bn_running_var": jnp.ones((classifier_hsz,), jnp.float32),
    }


def reference_forward(features, params):
    """Pure-JAX f32 reference of the eval-mode forward, for correctness check."""
    eps = 1e-5
    h = features @ params["w1"] + params["b1"]
    h = jnp.maximum(h, 0.0)
    scale = params["bn_gamma"] / jnp.sqrt(params["bn_running_var"] + eps)
    shift = params["bn_beta"] - params["bn_running_mean"] * scale
    h = h * scale.reshape(1, -1) + shift.reshape(1, -1)
    logits = h @ params["w2"] + params["b2"]
    return jax.nn.softmax(logits, axis=-1)


if __name__ == "__main__":
    hidden_size = 32
    classifier_hsz = 64
    categories = 16
    batch = 8

    key = jax.random.PRNGKey(0)
    k_param, k_x = jax.random.split(key)

    params = init_params(k_param, hidden_size, classifier_hsz, categories)
    features = jax.random.normal(k_x, (batch, hidden_size), dtype=jnp.float32)

    # One-time host-side preprocessing (BN fold + pad + bf16 cast), reused per call.
    prepared = prepare_params(params)

    fwd = jax.jit(functools.partial(bert_classifier_forward,
                                    categories=categories, batch_tile=512))
    probs = jax.block_until_ready(fwd(features, prepared))

    ref = reference_forward(features, params)
    assert probs.shape == (batch, categories)
    # Exact f32 softmax normalization -> rows sum to 1 within f32 rounding.
    assert jnp.allclose(jnp.sum(probs, axis=-1), 1.0, atol=1e-3)
    # bf16 MXU operands -> loosened elementwise tolerance vs f32 reference.
    assert jnp.allclose(probs, ref, atol=2e-2, rtol=2e-2)

    print("KERNEL_OK")
</pallas_src>

<mosaic_0001>
module attributes {stable_mosaic.version = 11 : i64} {
  func.func @bert_classifier_kernel(%arg0: i32, %arg1: memref<16x128xbf16, #tpu.memory_space<vmem>>, %arg2: memref<128x128xbf16, #tpu.memory_space<vmem>>, %arg3: memref<1x128xf32, #tpu.memory_space<vmem>>, %arg4: memref<128x128xbf16, #tpu.memory_space<vmem>>, %arg5: memref<1x128xf32, #tpu.memory_space<vmem>>, %arg6: memref<16x128xf32, #tpu.memory_space<vmem>>) attributes {dimension_semantics = [#tpu.dimension_semantics<parallel>], iteration_bounds = array<i64: 1>, scalar_prefetch = 0 : i64, scratch_operands = 0 : i64, tpu.core_type = #tpu.core_type<tc>, window_params = [{transform_indices = @transform_0, window_bounds = array<i64: 16, 128>}, {pipeline_mode = #tpu.pipeline_mode<synchronous>, transform_indices = @transform_1, window_bounds = array<i64: 128, 128>}, {pipeline_mode = #tpu.pipeline_mode<synchronous>, transform_indices = @transform_2, window_bounds = array<i64: 1, 128>}, {pipeline_mode = #tpu.pipeline_mode<synchronous>, transform_indices = @transform_3, window_bounds = array<i64: 128, 128>}, {pipeline_mode = #tpu.pipeline_mode<synchronous>, transform_indices = @transform_4, window_bounds = array<i64: 1, 128>}, {transform_indices = @transform_5, window_bounds = array<i64: 16, 128>}]} {
    %c0 = arith.constant 0 : index
    %c0_0 = arith.constant 0 : index
    %0 = vector.load %arg1[%c0, %c0_0] : memref<16x128xbf16, #tpu.memory_space<vmem>>, vector<16x128xbf16>
    %c0_1 = arith.constant 0 : index
    %c0_2 = arith.constant 0 : index
    %1 = vector.load %arg2[%c0_1, %c0_2] : memref<128x128xbf16, #tpu.memory_space<vmem>>, vector<128x128xbf16>
    %cst = arith.constant dense<0.000000e+00> : vector<16x128xf32>
    %2 = tpu.matmul %0, %1, %cst {dimension_numbers = #tpu.dot_dimension_numbers<[1], [0], [0], [1], [0, 0, 1, 1], [], []>} : vector<16x128xbf16>, vector<128x128xbf16>, vector<16x128xf32> -> vector<16x128xf32>
    %c0_3 = arith.constant 0 : index
    %c0_4 = arith.constant 0 : index
    %3 = vector.load %arg3[%c0_3, %c0_4] : memref<1x128xf32, #tpu.memory_space<vmem>>, vector<1x128xf32>
    %4 = vector.broadcast %3 : vector<1x128xf32> to vector<16x128xf32>
    %5 = arith.addf %2, %4 : vector<16x128xf32>
    %cst_5 = arith.constant 0.000000e+00 : f32
    %6 = vector.broadcast %cst_5 : f32 to vector<16x128xf32>
    %7 = arith.maximumf %5, %6 : vector<16x128xf32>
    %8 = arith.truncf %7 : vector<16x128xf32> to vector<16x128xbf16>
    %c0_6 = arith.constant 0 : index
    %c0_7 = arith.constant 0 : index
    %9 = vector.load %arg4[%c0_6, %c0_7] : memref<128x128xbf16, #tpu.memory_space<vmem>>, vector<128x128xbf16>
    %cst_8 = arith.constant dense<0.000000e+00> : vector<16x128xf32>
    %10 = tpu.matmul %8, %9, %cst_8 {dimension_numbers = #tpu.dot_dimension_numbers<[1], [0], [0], [1], [0, 0, 1, 1], [], []>} : vector<16x128xbf16>, vector<128x128xbf16>, vector<16x128xf32> -> vector<16x128xf32>
    %c0_9 = arith.constant 0 : index
    %c0_10 = arith.constant 0 : index
    %11 = vector.load %arg5[%c0_9, %c0_10] : memref<1x128xf32, #tpu.memory_space<vmem>>, vector<1x128xf32>
    %12 = vector.broadcast %11 : vector<1x128xf32> to vector<16x128xf32>
    %13 = arith.addf %10, %12 : vector<16x128xf32>
    %cst_11 = arith.constant dense<0xFF800000> : vector<16xf32>
    %14 = vector.multi_reduction <maximumf>, %13, %cst_11 [1] : vector<16x128xf32> to vector<16xf32>
    %15 = vector.shape_cast %14 : vector<16xf32> to vector<16x1xf32>
    %16 = vector.broadcast %15 : vector<16x1xf32> to vector<16x128xf32>
    %17 = arith.subf %13, %16 : vector<16x128xf32>
    %18 = math.exp %17 : vector<16x128xf32>
    %cst_12 = arith.constant dense<0.000000e+00> : vector<16xf32>
    %19 = vector.multi_reduction <add>, %18, %cst_12 [1] : vector<16x128xf32> to vector<16xf32>
    %20 = vector.shape_cast %19 : vector<16xf32> to vector<16x1xf32>
    %21 = vector.broadcast %20 : vector<16x1xf32> to vector<16x128xf32>
    %22 = arith.divf %18, %21 : vector<16x128xf32>
    %c0_13 = arith.constant 0 : index
    %c0_14 = arith.constant 0 : index
    %23 = vector.load %arg6[%c0_13, %c0_14] : memref<16x128xf32, #tpu.memory_space<vmem>>, vector<16x128xf32>
    tpu.vector_store %arg6[%c0_13, %c0_14], %22 {strides = array<i32>} : memref<16x128xf32, #tpu.memory_space<vmem>>, vector<16x128xf32>,
    return
  }
  func.func @transform_0(%arg0: i32) -> (i32, i32) {
    %c0_i32 = arith.constant 0 : i32
    %c0_i32_0 = arith.constant 0 : i32
    return %arg0, %c0_i32 : i32, i32
  }
  func.func @transform_1(%arg0: i32) -> (i32, i32) {
    %c0_i32 = arith.constant 0 : i32
    %c0_i32_0 = arith.constant 0 : i32
    %c0_i32_1 = arith.constant 0 : i32
    return %c0_i32, %c0_i32_0 : i32, i32
  }
  func.func @transform_2(%arg0: i32) -> (i32, i32) {
    %c0_i32 = arith.constant 0 : i32
    %c0_i32_0 = arith.constant 0 : i32
    %c0_i32_1 = arith.constant 0 : i32
    return %c0_i32, %c0_i32_0 : i32, i32
  }
  func.func @transform_3(%arg0: i32) -> (i32, i32) {
    %c0_i32 = arith.constant 0 : i32
    %c0_i32_0 = arith.constant 0 : i32
    %c0_i32_1 = arith.constant 0 : i32
    return %c0_i32, %c0_i32_0 : i32, i32
  }
  func.func @transform_4(%arg0: i32) -> (i32, i32) {
    %c0_i32 = arith.constant 0 : i32
    %c0_i32_0 = arith.constant 0 : i32
    %c0_i32_1 = arith.constant 0 : i32
    return %c0_i32, %c0_i32_0 : i32, i32
  }
  func.func @transform_5(%arg0: i32) -> (i32, i32) {
    %c0_i32 = arith.constant 0 : i32
    %c0_i32_0 = arith.constant 0 : i32
    return %arg0, %c0_i32 : i32, i32
  }
}

</mosaic_0001>

<bundles_post_ra>
// kernel: bert_classifier_forward.1
= control target key start
LH: loop header
LB: loop body
LE: loop exit
PB: predicated region body
PF: predicated region fallthrough
CT: control target
= control target key end

     0   :  { %10 = vsyncpa [#allocation3], 0  ;;  %s485_s0 = inlined_call_operand.vmem [shape: bf16[16,128], index: 0, kind: input, shape index: {}]   ;;  %s486_s1 = inlined_call_operand.hbm [shape: bf16[128,128], index: 1, kind: input, shape index: {}]   ;;  %s487_s2 = inlined_call_operand.vmem [shape: f32[1,128], index: 2, kind: input, shape index: {}]   ;;  %s488_s3 = inlined_call_operand.hbm [shape: bf16[128,128], index: 3, kind: input, shape index: {}]   ;;  %s489_s4 = inlined_call_operand.vmem [shape: f32[1,128], index: 4, kind: input, shape index: {}]   ;;  %s490_s5 = inlined_call_operand.vmem [shape: f32[16,128], index: 5, kind: output, shape index: {}]  }
   0x1   :  { %s18_s20 = sshll.u32 %s486_s1, 4  ;;  %s19_s20 = int_to_ptr.hbm [resolvable:$true] %s18_s20 }
   0x2   :  { %11 = vsyncpa [#allocation5], 0  ;;  %s430_s21 = smov [#allocation2]   ;;  %s33_s25 = sshll.u32 %s488_s3, 4  ;;  %s34_s25 = int_to_ptr.hbm [resolvable:$true] %s33_s25 }
   0x3   :  { %s20_s22 = sshll.u32 %s430_s21, 4  ;;  %s431_s26 = smov 64   ;;  %s21_s22 = int_to_ptr.vmem [resolvable:$true] %s20_s22 }
   0x4   :  { %s432_s27 = smov 4   ;;  %s433_s28 = smov [#allocation4]  }
   0x5   :  { %26 = dma.hbm_to_vmem [thread:$0]  %s19_s20, 1024, %s21_s22, [#allocation3], %s431_s26, %s431_s26, %s432_s27  }
   0x6   :  { %s35_s29 = sshll.u32 %s433_s28, 4  ;;  %s36_s29 = int_to_ptr.vmem [resolvable:$true] %s35_s29 }
   0x7   :  { %41 = dma.hbm_to_vmem [thread:$0]  %s34_s25, 1024, %s36_s29, [#allocation5], %s431_s26, %s431_s26, %s432_s27  }
   0x8   :  { %426 = dma.done.wait [#allocation3], 1024  }
   0x9   :  { %427 = vsyncadd [#allocation3], 4294966272 }
   0xa   :  { %428 = dma.done.wait [#allocation5], 1024  }
   0xb   :  { %429 = vsyncadd [#allocation5], 4294966272  ;;  %v355_v0 = vld [vmem:[#allocation2 + $0x38] sm:$0xff]  ;;  %v354_v1 = vld [vmem:[#allocation2 + $0x30] sm:$0xff] }
   0xc   :  { %128 = vmatpush.bf16.msra.mxu0 %v355_v0  ;;  %v363_v2 = vld [vmem:[#allocation4 + $0x38] sm:$0xff]  ;;  %v362_v3 = vld [vmem:[#allocation4 + $0x30] sm:$0xff]  ;;  %v353_v4 = vld [vmem:[#allocation2 + $0x28] sm:$0xff] }
   0xd   :  { %213 = vmatpush.bf16.msra.mxu1 %v363_v2  ;;  %v361_v5 = vld [vmem:[#allocation4 + $0x28] sm:$0xff]  ;;  %v352_v6 = vld [vmem:[#allocation2 + $0x20] sm:$0xff]  ;;  %v351_v8 = vld [vmem:[#allocation2 + $0x18] sm:$0xff] }
   0xe   :  { %v360_v7 = vld [vmem:[#allocation4 + $0x20] sm:$0xff]  ;;  %v350_v9 = vld [vmem:[#allocation2 + $0x10] sm:$0xff]  ;;  %v349_v10 = vld [vmem:[#allocation2 + $0x8] sm:$0xff] }
   0xf   :  { %v348_v11 = vld [vmem:[#allocation2] sm:$0xff]  ;;  %v359_v13 = vld [vmem:[#allocation4 + $0x18] sm:$0xff]  ;;  %v358_v14 = vld [vmem:[#allocation4 + $0x10] sm:$0xff] }
  0x10   :  { %129 = vmatpush.bf16.msra.mxu0 %v354_v1  ;;  %v347_v12 = vld [vmem:[%s485_s0] sm:$0xff]  ;;  %v357_v15 = vld [vmem:[#allocation4 + $0x8] sm:$0xff] }
  0x11   :  { %214 = vmatpush.bf16.msra.mxu1 %v362_v3  ;;  %v356_v16 = vld [vmem:[#allocation4] sm:$0xff] }
  0x12   :  { %v368_v18 = vld [vmem:[%s487_s2] ss:$0 sm:$0xff] }
  0x13   :  { %v369_v25 = vld [vmem:[%s489_s4] ss:$0 sm:$0xff] }
  0x14   :  { %130 = vmatpush.bf16.msra.mxu0 %v353_v4 }
  0x15   :  { %215 = vmatpush.bf16.msra.mxu1 %v361_v5 }
  0x18   :  { %131 = vmatpush.bf16.msra.mxu0 %v352_v6 }
  0x19   :  { %216 = vmatpush.bf16.msra.mxu1 %v360_v7 }
  0x1c   :  { %132 = vmatpush.bf16.msra.mxu0 %v351_v8 }
  0x1d   :  { %217 = vmatpush.bf16.msra.mxu1 %v359_v13 }
  0x20   :  { %133 = vmatpush.bf16.msra.mxu0 %v350_v9 }
  0x21   :  { %218 = vmatpush.bf16.msra.mxu1 %v358_v14 }
  0x24   :  { %134 = vmatpush.bf16.msra.mxu0 %v349_v10 }
  0x25   :  { %219 = vmatpush.bf16.msra.mxu1 %v357_v15 }
  0x28   :  { %135 = vmatpush.bf16.msra.mxu0 %v348_v11 }
  0x29   :  { %220 = vmatpush.bf16.msra.mxu1 %v356_v16 }
  0x2b   :  { %136 = vmatmul.bf16.vlgmr.msra.gmra.mxu0 %v347_v12 }
  0xa8   :  { %v137_v17 = vpop.f32.mrf.mxu0 }
  0xa9   :  { %v138_v19 = vadd.f32 %v368_v18, %v137_v17 }
  0xab   :  { %v142_v22 = vmax.f32 %v138_v19, 0.0 }
  0xb0   :  { %v139_v20 = vpop.f32.mrf.mxu0 }
  0xb1   :  { %v140_v21 = vadd.f32 %v368_v18, %v139_v20 }
  0xb3   :  { %v143_v23 = vmax.f32 %v140_v21, 0.0 }
  0xb5   :  { %v144_v24 = vpack.c.bf16 %v143_v23, %v142_v22 }
  0xb7   :  { %221 = vmatmul.bf16.vlgmr.msra.gmra.mxu1 %v144_v24 }
 0x134   :  { %v222_v26 = vpop.f32.mrf.mxu1 }
 0x135   :  { %v223_v27 = vadd.f32 %v369_v25, %v222_v26 }
 0x137   :  { %227 = vmax.xlane.f32.xlu0 %v223_v27 }
 0x13c   :  { %v224_v28 = vpop.f32.mrf.mxu1 }
 0x13d   :  { %v225_v29 = vadd.f32 %v369_v25, %v224_v28 }
 0x13f   :  { %229 = vmax.xlane.f32.xlu0 %v225_v29 }
 0x1aa   :  { %v228_v30 = vpop.xlane.xlu0 %227 }
 0x1ab   :  { %v231_v31 = vsub.f32 %v223_v27, %v228_v30 }
 0x1ad   :  { %v233_v32 = vmul.f32 1.442695, %v231_v31 }
 0x1af   :  { %370 = vpow2.f32 %v233_v32 }
 0x1b2   :  { %v230_v33 = vpop.xlane.xlu0 %229 }
 0x1b3   :  { %v232_v34 = vsub.f32 %v225_v29, %v230_v33 }
 0x1b5   :  { %v371_v35 = vpop.eup %370  ;;  %v235_v36 = vmul.f32 1.442695, %v232_v34 }
 0x1b6   :  { %237 = vadd.xlane.f32.xlu1 %v371_v35 }
 0x1b7   :  { %372 = vpow2.f32 %v235_v36 }
 0x1bd   :  { %v373_v37 = vpop.eup %372 }
 0x1be   :  { %239 = vadd.xlane.f32.xlu1 %v373_v37 }
 0x229   :  { %v238_v38 = vpop.xlane.xlu1 %237 }
 0x22a   :  { %374 = vrcp.f32 %v238_v38  ;;  %v252_v43 = vand.u32 2147483648, %v238_v38  ;;  %v250_v45 = vand.u32 2147483647, %v238_v38  ;;  %vm246_vm1 = vweird.f32 %v238_v38 }
 0x22c   :  { %v253_v48 = vor.u32 1.1754944e-38, %v252_v43  ;;  %vm251_vm3 = vcmp.eq.f32.partialorder %v250_v45, 8.507059e+37 }
 0x230   :  { %v375_v39 = vpop.eup %374 }
 0x231   :  { %v242_v40 = vmul.f32 %v375_v39, %v238_v38  ;;  %v240_v41 = vpop.xlane.xlu1 %239  ;;  %vm247_vm0 = vweird.f32 %v375_v39 }
 0x232   :  { %376 = vrcp.f32 %v240_v41  ;;  %vm248_vm2 = vmor %vm246_vm1, %vm247_vm0  ;;  %v267_v54 = vand.u32 2147483648, %v240_v41  ;;  %v265_v56 = vand.u32 2147483647, %v240_v41  ;;  %vm261_vm5 = vweird.f32 %v240_v41 }
 0x233   :  { %v243_v42 = vsub.f32 1.0, %v242_v40 }
 0x234   :  { %v268_v58 = vor.u32 1.1754944e-38, %v267_v54  ;;  %vm266_vm7 = vcmp.eq.f32.partialorder %v265_v56, 8.507059e+37 }
 0x235   :  { %v244_v44 = vmul.f32 %v375_v39, %v243_v42 }
 0x237   :  { %v245_v46 = vadd.f32 %v375_v39, %v244_v44 }
 0x238   :  { %v377_v47 = vpop.eup %376 }
 0x239   :  { %v249_v49 = vsel %vm248_vm2, %v375_v39, %v245_v46  ;;  %v257_v50 = vmul.f32 %v377_v47, %v240_v41  ;;  %vm262_vm4 = vweird.f32 %v377_v47 }
 0x23a   :  { %v254_v51 = vsel %vm251_vm3, %v253_v48, %v249_v49  ;;  %vm263_vm6 = vmor %vm261_vm5, %vm262_vm4 }
 0x23b   :  { %v255_v52 = vmul.f32 %v371_v35, %v254_v51  ;;  %v258_v53 = vsub.f32 1.0, %v257_v50 }
 0x23d   :  { %271 = vst [vmem:[%s490_s5] sm:$0xff] %v255_v52  ;;  %v259_v55 = vmul.f32 %v377_v47, %v258_v53 }
 0x23f   :  { %v260_v57 = vadd.f32 %v377_v47, %v259_v55 }
 0x241   :  { %v264_v59 = vsel %vm263_vm6, %v377_v47, %v260_v57 }
 0x242   :  { %v269_v60 = vsel %vm266_vm7, %v268_v58, %v264_v59 }
 0x243   :  { %v270_v61 = vmul.f32 %v373_v37, %v269_v60 }
 0x245   :  { %272 = vst [vmem:[%s490_s5 + $0x8] sm:$0xff] %v270_v61 }
 0x246   :  { %277 = vsyncpa [#allocation3], 1 }
 0x247   :  { %278 = vsyncpa [#allocation5], 1 }

</bundles_post_ra>
